<compile_context>
chip_gen: v7x
topology: tpu7x:2x2x1
jax: 0.10.0
libtpu: 0.0.40
codegen_flags: <defaults>
</compile_context>

<pallas_src>
import math

import jax
import jax.numpy as jnp
from jax.experimental import pallas as pl
from jax.experimental.pallas import tpu as pltpu

LANE = 128                        # TPU lane width; channel dims padded to this
BN_EPS = 1e-5
VMEM_LIMIT = 32 * 1024 * 1024     # safe scoped-VMEM budget on v5e/v6e/v7x


# ----------------------------------------------------------------------------- utils
def _round_up(x, m):
    return (x + m - 1) // m * m


def _pad_last(a, target):
    if a.shape[-1] == target:
        return a
    pad = [(0, 0)] * (a.ndim - 1) + [(0, target - a.shape[-1])]
    return jnp.pad(a, pad)


def _pad_mat(w, rows, cols):
    return jnp.pad(w, ((0, rows - w.shape[0]), (0, cols - w.shape[1])))


# --------------------------------------------------------------------------- kernel
def _gnn_fused_kernel(x_ref, adj_ref,
                      w1_ref, b1_ref, g1_ref, be1_ref,
                      w2_ref, b2_ref, g2_ref, be2_ref,
                      w3_ref, b3_ref, g3_ref, be3_ref,
                      lw_ref, lb_ref,
                      out_ref):
    B, N, _ = x_ref.shape
    BN = B * N
    inv_bn = 1.0 / BN

    # Degree normalization folded into the adjacency rows (exact clamp + divide),
    # then a single bf16 cast for the MXU. 0/1 * 1/deg values are fine in bf16.
    adj = adj_ref[...]                                          # (B, N, N) f32
    deg = jnp.sum(adj, axis=-1, keepdims=True)
    adj_n = (adj / jnp.maximum(deg, 1.0)).astype(jnp.bfloat16)

    def sage_relu_bn(h, w_ref, b_ref, g_ref, be_ref):
        # h: (B, N, C_in_p) f32.  One wide-K dot: [agg | h] @ [W_rel ; W_root].
        h16 = h.astype(jnp.bfloat16)
        agg = jnp.einsum('bij,bjc->bic', adj_n, h16,
                         preferred_element_type=jnp.float32)    # (B, N, C_in_p)
        cat = jnp.concatenate([agg.astype(jnp.bfloat16), h16], axis=-1)
        z = jnp.dot(cat.reshape(BN, -1), w_ref[...],
                    preferred_element_type=jnp.float32) + b_ref[...]
        z = jnp.maximum(z, 0.0)                                 # ReLU before BN

        # BatchNorm1d over all B*N rows, training mode (biased variance), f32 math.
        mean = jnp.sum(z, axis=0, keepdims=True) * inv_bn
        var = jnp.maximum(jnp.sum(z * z, axis=0, keepdims=True) * inv_bn
                          - mean * mean, 0.0)
        scale = g_ref[...] * jax.lax.rsqrt(var + BN_EPS)
        xbn = (z - mean) * scale + be_ref[...]                  # padded lanes stay 0
        return xbn.reshape(B, N, -1)
        # TODO(synk): BatchNorm1d running_mean/running_var buffer updates are
        # stateful training-side effects and are not reproduced (pure forward).

    x1 = sage_relu_bn(x_ref[...], w1_ref, b1_ref, g1_ref, be1_ref)
    x2 = sage_relu_bn(x1, w2_ref, b2_ref, g2_ref, be2_ref)
    x3 = sage_relu_bn(x2, w3_ref, b3_ref, g3_ref, be3_ref)

    # Final Linear on the concat: one dot with K = 2*H_p + O_p, then ReLU.
    cat = jnp.concatenate([x1, x2, x3], axis=-1).astype(jnp.bfloat16)
    y = jnp.dot(cat.reshape(BN, -1), lw_ref[...],
                preferred_element_type=jnp.float32) + lb_ref[...]
    out_ref[...] = jnp.maximum(y, 0.0).reshape(B, N, -1)


# --------------------------------------------------------------------------- wrapper
def gnn_forward(x, adj, params):
    B, N, Cin = x.shape
    H = params['w1_rel'].shape[1]
    O = params['w3_rel'].shape[1]
    Cin_p, H_p, O_p = (_round_up(c, LANE) for c in (Cin, H, O))
    f32, bf16 = jnp.float32, jnp.bfloat16

    x_p = _pad_last(x.astype(f32), Cin_p)
    adj = adj.astype(f32)

    # Merge [W_rel ; W_root] per conv (rows stacked along the contraction axis),
    # zero-pad to lane-dense widths, pre-cast to bf16 once on the HBM side.
    def stack_conv(wr, wo, cin_p, cout_p):
        return jnp.concatenate([_pad_mat(wr, cin_p, cout_p),
                                _pad_mat(wo, cin_p, cout_p)], axis=0).astype(bf16)

    w1 = stack_conv(params['w1_rel'], params['w1_root'], Cin_p, H_p)
    w2 = stack_conv(params['w2_rel'], params['w2_root'], H_p, H_p)
    w3 = stack_conv(params['w3_rel'], params['w3_root'], H_p, O_p)

    b1, g1, be1 = (_pad_last(params[k].astype(f32), H_p) for k in ('b1_rel', 'g1', 'be1'))
    b2, g2, be2 = (_pad_last(params[k].astype(f32), H_p) for k in ('b2_rel', 'g2', 'be2'))
    b3, g3, be3 = (_pad_last(params[k].astype(f32), O_p) for k in ('b3_rel', 'g3', 'be3'))

    # Final Linear: stack the split weights along the (padded) concat axis.
    lw = jnp.concatenate([_pad_mat(params['lw1'], H_p, O_p),
                          _pad_mat(params['lw2'], H_p, O_p),
                          _pad_mat(params['lw3'], O_p, O_p)], axis=0).astype(bf16)
    lb = _pad_last(params['lb'].astype(f32), O_p)

    args = (x_p, adj, w1, b1, g1, be1, w2, b2, g2, be2, w3, b3, g3, be3, lw, lb)

    flops = 2 * B * N * (3 * N * max(Cin_p, H_p)
                         + 2 * Cin_p * H_p + 2 * H_p * H_p + 2 * H_p * O_p
                         + (2 * H_p + O_p) * O_p)
    bytes_acc = int(sum(a.size * a.dtype.itemsize for a in args)) + B * N * O_p * 4

    out_p = pl.pallas_call(
        _gnn_fused_kernel,
        in_specs=[pl.BlockSpec(memory_space=pltpu.MemorySpace.VMEM) for _ in args],
        out_specs=pl.BlockSpec(memory_space=pltpu.MemorySpace.VMEM),
        out_shape=jax.ShapeDtypeStruct((B, N, O_p), f32),
        compiler_params=pltpu.CompilerParams(vmem_limit_bytes=VMEM_LIMIT),
        cost_estimate=pl.CostEstimate(flops=flops,
                                      transcendentals=3 * (H_p + O_p),
                                      bytes_accessed=bytes_acc),
    )(*args)

    return out_p[..., :O]                        # drop lane padding


# ------------------------------------------------------------------- pure-JAX reference
def gnn_reference(x, adj, params):
    def sage(h, wr, br, wo):
        deg = jnp.maximum(jnp.sum(adj, -1, keepdims=True), 1.0)
        agg = jnp.einsum('bij,bjc->bic', adj, h) / deg
        return agg @ wr + br + h @ wo

    def bn(z, g, be):
        B, N, C = z.shape
        z2 = z.reshape(-1, C)
        m = z2.mean(0)
        v = z2.var(0)                                  # biased (training-mode BN)
        return ((z2 - m) / jnp.sqrt(v + BN_EPS) * g + be).reshape(B, N, C)

    x1 = bn(jax.nn.relu(sage(x, params['w1_rel'], params['b1_rel'],
                             params['w1_root'])), params['g1'], params['be1'])
    x2 = bn(jax.nn.relu(sage(x1, params['w2_rel'], params['b2_rel'],
                             params['w2_root'])), params['g2'], params['be2'])
    x3 = bn(jax.nn.relu(sage(x2, params['w3_rel'], params['b3_rel'],
                             params['w3_root'])), params['g3'], params['be3'])
    cat = jnp.concatenate([x1, x2, x3], axis=-1)
    w = jnp.concatenate([params['lw1'], params['lw2'], params['lw3']], axis=0)
    return jax.nn.relu(cat @ w + params['lb'])


# ----------------------------------------------------------------------------- params
def init_params(key, in_channels, hidden_channels, out_channels):
    ks = jax.random.split(key, 16)

    def w(k, cin, cout):
        return jax.random.normal(k, (cin, cout), jnp.float32) * 0.1

    def b(k, c):
        return jax.random.normal(k, (1, c), jnp.float32) * 0.1

    h, o = hidden_channels, out_channels
    return dict(
        # conv1 (DenseSAGEConv): lin_rel + bias, lin_root (bias folded into b_rel)
        w1_rel=w(ks[0], in_channels, h), b1_rel=b(ks[1], h), w1_root=w(ks[2], in_channels, h),
        g1=jnp.ones((1, h), jnp.float32), be1=jnp.zeros((1, h), jnp.float32),
        # conv2
        w2_rel=w(ks[3], h, h), b2_rel=b(ks[4], h), w2_root=w(ks[5], h, h),
        g2=jnp.ones((1, h), jnp.float32), be2=jnp.zeros((1, h), jnp.float32),
        # conv3
        w3_rel=w(ks[6], h, o), b3_rel=b(ks[7], o), w3_root=w(ks[8], h, o),
        g3=jnp.ones((1, o), jnp.float32), be3=jnp.zeros((1, o), jnp.float32),
        # final Linear(2*h + o, o), weight split along the concat axis
        lw1=w(ks[9], h, o), lw2=w(ks[10], h, o), lw3=w(ks[11], o, o),
        lb=b(ks[12], o),
    )


if __name__ == "__main__":
    key = jax.random.PRNGKey(0)
    B, N = 2, 16
    in_channels, hidden_channels, out_channels = 8, 32, 32

    k_x, k_a, k_p = jax.random.split(key, 3)
    x = jax.random.normal(k_x, (B, N, in_channels), jnp.float32)
    a = (jax.random.uniform(k_a, (B, N, N)) < 0.3).astype(jnp.float32)
    adj = jnp.maximum(a, jnp.transpose(a, (0, 2, 1)))   # symmetric 0/1 adjacency

    params = init_params(k_p, in_channels, hidden_channels, out_channels)

    out = jax.jit(gnn_forward)(x, adj, params)
    jax.block_until_ready(out)

    assert out.shape == (B, N, out_channels)
    assert bool(jnp.all(jnp.isfinite(out)))

    # Loose tolerance: kernel uses bf16 on the MXU (f32 accumulation), reference is f32.
    ref = gnn_reference(x, adj, params)
    max_diff = float(jnp.max(jnp.abs(out - ref)))
    assert max_diff < 1e-1, f"kernel/reference mismatch: max |diff| = {max_diff}"

    print("KERNEL_OK")
</pallas_src>

<mosaic_0001>
module attributes {stable_mosaic.version = 11 : i64} {
  func.func @_gnn_fused_kernel(%arg0: memref<2x16x128xf32, #tpu.memory_space<vmem>>, %arg1: memref<2x16x16xf32, #tpu.memory_space<vmem>>, %arg2: memref<256x128xbf16, #tpu.memory_space<vmem>>, %arg3: memref<1x128xf32, #tpu.memory_space<vmem>>, %arg4: memref<1x128xf32, #tpu.memory_space<vmem>>, %arg5: memref<1x128xf32, #tpu.memory_space<vmem>>, %arg6: memref<256x128xbf16, #tpu.memory_space<vmem>>, %arg7: memref<1x128xf32, #tpu.memory_space<vmem>>, %arg8: memref<1x128xf32, #tpu.memory_space<vmem>>, %arg9: memref<1x128xf32, #tpu.memory_space<vmem>>, %arg10: memref<256x128xbf16, #tpu.memory_space<vmem>>, %arg11: memref<1x128xf32, #tpu.memory_space<vmem>>, %arg12: memref<1x128xf32, #tpu.memory_space<vmem>>, %arg13: memref<1x128xf32, #tpu.memory_space<vmem>>, %arg14: memref<384x128xbf16, #tpu.memory_space<vmem>>, %arg15: memref<1x128xf32, #tpu.memory_space<vmem>>, %arg16: memref<2x16x128xf32, #tpu.memory_space<vmem>>) attributes {dimension_semantics = [], scalar_prefetch = 0 : i64, scratch_operands = 0 : i64, tpu.core_type = #tpu.core_type<tc>} {
    %c0 = arith.constant 0 : index
    %c0_0 = arith.constant 0 : index
    %c0_1 = arith.constant 0 : index
    %0 = vector.load %arg1[%c0, %c0_0, %c0_1] : memref<2x16x16xf32, #tpu.memory_space<vmem>>, vector<2x16x16xf32>
    %cst = arith.constant dense<0.000000e+00> : vector<2x16xf32>
    %1 = vector.multi_reduction <add>, %0, %cst [2] : vector<2x16x16xf32> to vector<2x16xf32>
    %2 = vector.shape_cast %1 : vector<2x16xf32> to vector<2x16x1xf32>
    %cst_2 = arith.constant 1.000000e+00 : f32
    %3 = vector.broadcast %cst_2 : f32 to vector<2x16x1xf32>
    %4 = arith.maximumf %2, %3 : vector<2x16x1xf32>
    %5 = vector.broadcast %4 : vector<2x16x1xf32> to vector<2x16x16xf32>
    %6 = arith.divf %0, %5 : vector<2x16x16xf32>
    %7 = arith.truncf %6 : vector<2x16x16xf32> to vector<2x16x16xbf16>
    %c0_3 = arith.constant 0 : index
    %c0_4 = arith.constant 0 : index
    %c0_5 = arith.constant 0 : index
    %8 = vector.load %arg0[%c0_3, %c0_4, %c0_5] : memref<2x16x128xf32, #tpu.memory_space<vmem>>, vector<2x16x128xf32>
    %9 = arith.truncf %8 : vector<2x16x128xf32> to vector<2x16x128xbf16>
    "tpu.trace_start"() <{level = 10 : i32, message = "bij,bjc->bic"}> : () -> ()
    %cst_6 = arith.constant dense<0.000000e+00> : vector<2x16x128xf32>
    %10 = tpu.matmul %7, %9, %cst_6 {dimension_numbers = #tpu.dot_dimension_numbers<[2], [1], [1], [2], [0, 0, 0, 1, 1, 2], [0], [0]>} : vector<2x16x16xbf16>, vector<2x16x128xbf16>, vector<2x16x128xf32> -> vector<2x16x128xf32>
    "tpu.trace_stop"() : () -> ()
    %11 = arith.truncf %10 : vector<2x16x128xf32> to vector<2x16x128xbf16>
    %12 = tpu.concatenate %11, %9 in 2 : vector<2x16x128xbf16>, vector<2x16x128xbf16> -> vector<2x16x256xbf16>
    %13 = vector.shape_cast %12 : vector<2x16x256xbf16> to vector<32x256xbf16>
    %c0_7 = arith.constant 0 : index
    %c0_8 = arith.constant 0 : index
    %14 = vector.load %arg2[%c0_7, %c0_8] : memref<256x128xbf16, #tpu.memory_space<vmem>>, vector<256x128xbf16>
    %cst_9 = arith.constant dense<0.000000e+00> : vector<32x128xf32>
    %15 = tpu.matmul %13, %14, %cst_9 {dimension_numbers = #tpu.dot_dimension_numbers<[1], [0], [0], [1], [0, 0, 1, 1], [], []>} : vector<32x256xbf16>, vector<256x128xbf16>, vector<32x128xf32> -> vector<32x128xf32>
    %c0_10 = arith.constant 0 : index
    %c0_11 = arith.constant 0 : index
    %16 = vector.load %arg3[%c0_10, %c0_11] : memref<1x128xf32, #tpu.memory_space<vmem>>, vector<1x128xf32>
    %17 = vector.broadcast %16 : vector<1x128xf32> to vector<32x128xf32>
    %18 = arith.addf %15, %17 : vector<32x128xf32>
    %cst_12 = arith.constant 0.000000e+00 : f32
    %19 = vector.broadcast %cst_12 : f32 to vector<32x128xf32>
    %20 = arith.maximumf %18, %19 : vector<32x128xf32>
    %cst_13 = arith.constant dense<0.000000e+00> : vector<128xf32>
    %21 = vector.multi_reduction <add>, %20, %cst_13 [0] : vector<32x128xf32> to vector<128xf32>
    %22 = vector.shape_cast %21 : vector<128xf32> to vector<1x128xf32>
    %cst_14 = arith.constant 3.125000e-02 : f32
    %23 = vector.broadcast %cst_14 : f32 to vector<1x128xf32>
    %24 = arith.mulf %22, %23 : vector<1x128xf32>
    %25 = arith.mulf %20, %20 : vector<32x128xf32>
    %cst_15 = arith.constant dense<0.000000e+00> : vector<128xf32>
    %26 = vector.multi_reduction <add>, %25, %cst_15 [0] : vector<32x128xf32> to vector<128xf32>
    %27 = vector.shape_cast %26 : vector<128xf32> to vector<1x128xf32>
    %cst_16 = arith.constant 3.125000e-02 : f32
    %28 = vector.broadcast %cst_16 : f32 to vector<1x128xf32>
    %29 = arith.mulf %27, %28 : vector<1x128xf32>
    %30 = arith.mulf %24, %24 : vector<1x128xf32>
    %31 = arith.subf %29, %30 : vector<1x128xf32>
    %cst_17 = arith.constant 0.000000e+00 : f32
    %32 = vector.broadcast %cst_17 : f32 to vector<1x128xf32>
    %33 = arith.maximumf %31, %32 : vector<1x128xf32>
    %c0_18 = arith.constant 0 : index
    %c0_19 = arith.constant 0 : index
    %34 = vector.load %arg4[%c0_18, %c0_19] : memref<1x128xf32, #tpu.memory_space<vmem>>, vector<1x128xf32>
    %cst_20 = arith.constant 9.99999974E-6 : f32
    %35 = vector.broadcast %cst_20 : f32 to vector<1x128xf32>
    %36 = arith.addf %33, %35 : vector<1x128xf32>
    %37 = math.rsqrt %36 : vector<1x128xf32>
    %38 = arith.mulf %34, %37 : vector<1x128xf32>
    %39 = vector.broadcast %24 : vector<1x128xf32> to vector<32x128xf32>
    %40 = arith.subf %20, %39 : vector<32x128xf32>
    %41 = vector.broadcast %38 : vector<1x128xf32> to vector<32x128xf32>
    %42 = arith.mulf %40, %41 : vector<32x128xf32>
    %c0_21 = arith.constant 0 : index
    %c0_22 = arith.constant 0 : index
    %43 = vector.load %arg5[%c0_21, %c0_22] : memref<1x128xf32, #tpu.memory_space<vmem>>, vector<1x128xf32>
    %44 = vector.broadcast %43 : vector<1x128xf32> to vector<32x128xf32>
    %45 = arith.addf %42, %44 : vector<32x128xf32>
    %46 = vector.shape_cast %45 : vector<32x128xf32> to vector<2x16x128xf32>
    %47 = arith.truncf %46 : vector<2x16x128xf32> to vector<2x16x128xbf16>
    "tpu.trace_start"() <{level = 10 : i32, message = "bij,bjc->bic"}> : () -> ()
    %cst_23 = arith.constant dense<0.000000e+00> : vector<2x16x128xf32>
    %48 = tpu.matmul %7, %47, %cst_23 {dimension_numbers = #tpu.dot_dimension_numbers<[2], [1], [1], [2], [0, 0, 0, 1, 1, 2], [0], [0]>} : vector<2x16x16xbf16>, vector<2x16x128xbf16>, vector<2x16x128xf32> -> vector<2x16x128xf32>
    "tpu.trace_stop"() : () -> ()
    %49 = arith.truncf %48 : vector<2x16x128xf32> to vector<2x16x128xbf16>
    %50 = tpu.concatenate %49, %47 in 2 : vector<2x16x128xbf16>, vector<2x16x128xbf16> -> vector<2x16x256xbf16>
    %51 = vector.shape_cast %50 : vector<2x16x256xbf16> to vector<32x256xbf16>
    %c0_24 = arith.constant 0 : index
    %c0_25 = arith.constant 0 : index
    %52 = vector.load %arg6[%c0_24, %c0_25] : memref<256x128xbf16, #tpu.memory_space<vmem>>, vector<256x128xbf16>
    %cst_26 = arith.constant dense<0.000000e+00> : vector<32x128xf32>
    %53 = tpu.matmul %51, %52, %cst_26 {dimension_numbers = #tpu.dot_dimension_numbers<[1], [0], [0], [1], [0, 0, 1, 1], [], []>} : vector<32x256xbf16>, vector<256x128xbf16>, vector<32x128xf32> -> vector<32x128xf32>
    %c0_27 = arith.constant 0 : index
    %c0_28 = arith.constant 0 : index
    %54 = vector.load %arg7[%c0_27, %c0_28] : memref<1x128xf32, #tpu.memory_space<vmem>>, vector<1x128xf32>
    %55 = vector.broadcast %54 : vector<1x128xf32> to vector<32x128xf32>
    %56 = arith.addf %53, %55 : vector<32x128xf32>
    %cst_29 = arith.constant 0.000000e+00 : f32
    %57 = vector.broadcast %cst_29 : f32 to vector<32x128xf32>
    %58 = arith.maximumf %56, %57 : vector<32x128xf32>
    %cst_30 = arith.constant dense<0.000000e+00> : vector<128xf32>
    %59 = vector.multi_reduction <add>, %58, %cst_30 [0] : vector<32x128xf32> to vector<128xf32>
    %60 = vector.shape_cast %59 : vector<128xf32> to vector<1x128xf32>
    %cst_31 = arith.constant 3.125000e-02 : f32
    %61 = vector.broadcast %cst_31 : f32 to vector<1x128xf32>
    %62 = arith.mulf %60, %61 : vector<1x128xf32>
    %63 = arith.mulf %58, %58 : vector<32x128xf32>
    %cst_32 = arith.constant dense<0.000000e+00> : vector<128xf32>
    %64 = vector.multi_reduction <add>, %63, %cst_32 [0] : vector<32x128xf32> to vector<128xf32>
    %65 = vector.shape_cast %64 : vector<128xf32> to vector<1x128xf32>
    %cst_33 = arith.constant 3.125000e-02 : f32
    %66 = vector.broadcast %cst_33 : f32 to vector<1x128xf32>
    %67 = arith.mulf %65, %66 : vector<1x128xf32>
    %68 = arith.mulf %62, %62 : vector<1x128xf32>
    %69 = arith.subf %67, %68 : vector<1x128xf32>
    %cst_34 = arith.constant 0.000000e+00 : f32
    %70 = vector.broadcast %cst_34 : f32 to vector<1x128xf32>
    %71 = arith.maximumf %69, %70 : vector<1x128xf32>
    %c0_35 = arith.constant 0 : index
    %c0_36 = arith.constant 0 : index
    %72 = vector.load %arg8[%c0_35, %c0_36] : memref<1x128xf32, #tpu.memory_space<vmem>>, vector<1x128xf32>
    %cst_37 = arith.constant 9.99999974E-6 : f32
    %73 = vector.broadcast %cst_37 : f32 to vector<1x128xf32>
    %74 = arith.addf %71, %73 : vector<1x128xf32>
    %75 = math.rsqrt %74 : vector<1x128xf32>
    %76 = arith.mulf %72, %75 : vector<1x128xf32>
    %77 = vector.broadcast %62 : vector<1x128xf32> to vector<32x128xf32>
    %78 = arith.subf %58, %77 : vector<32x128xf32>
    %79 = vector.broadcast %76 : vector<1x128xf32> to vector<32x128xf32>
    %80 = arith.mulf %78, %79 : vector<32x128xf32>
    %c0_38 = arith.constant 0 : index
    %c0_39 = arith.constant 0 : index
    %81 = vector.load %arg9[%c0_38, %c0_39] : memref<1x128xf32, #tpu.memory_space<vmem>>, vector<1x128xf32>
    %82 = vector.broadcast %81 : vector<1x128xf32> to vector<32x128xf32>
    %83 = arith.addf %80, %82 : vector<32x128xf32>
    %84 = vector.shape_cast %83 : vector<32x128xf32> to vector<2x16x128xf32>
    %85 = arith.truncf %84 : vector<2x16x128xf32> to vector<2x16x128xbf16>
    "tpu.trace_start"() <{level = 10 : i32, message = "bij,bjc->bic"}> : () -> ()
    %cst_40 = arith.constant dense<0.000000e+00> : vector<2x16x128xf32>
    %86 = tpu.matmul %7, %85, %cst_40 {dimension_numbers = #tpu.dot_dimension_numbers<[2], [1], [1], [2], [0, 0, 0, 1, 1, 2], [0], [0]>} : vector<2x16x16xbf16>, vector<2x16x128xbf16>, vector<2x16x128xf32> -> vector<2x16x128xf32>
    "tpu.trace_stop"() : () -> ()
    %87 = arith.truncf %86 : vector<2x16x128xf32> to vector<2x16x128xbf16>
    %88 = tpu.concatenate %87, %85 in 2 : vector<2x16x128xbf16>, vector<2x16x128xbf16> -> vector<2x16x256xbf16>
    %89 = vector.shape_cast %88 : vector<2x16x256xbf16> to vector<32x256xbf16>
    %c0_41 = arith.constant 0 : index
    %c0_42 = arith.constant 0 : index
    %90 = vector.load %arg10[%c0_41, %c0_42] : memref<256x128xbf16, #tpu.memory_space<vmem>>, vector<256x128xbf16>
    %cst_43 = arith.constant dense<0.000000e+00> : vector<32x128xf32>
    %91 = tpu.matmul %89, %90, %cst_43 {dimension_numbers = #tpu.dot_dimension_numbers<[1], [0], [0], [1], [0, 0, 1, 1], [], []>} : vector<32x256xbf16>, vector<256x128xbf16>, vector<32x128xf32> -> vector<32x128xf32>
    %c0_44 = arith.constant 0 : index
    %c0_45 = arith.constant 0 : index
    %92 = vector.load %arg11[%c0_44, %c0_45] : memref<1x128xf32, #tpu.memory_space<vmem>>, vector<1x128xf32>
    %93 = vector.broadcast %92 : vector<1x128xf32> to vector<32x128xf32>
    %94 = arith.addf %91, %93 : vector<32x128xf32>
    %cst_46 = arith.constant 0.000000e+00 : f32
    %95 = vector.broadcast %cst_46 : f32 to vector<32x128xf32>
    %96 = arith.maximumf %94, %95 : vector<32x128xf32>
    %cst_47 = arith.constant dense<0.000000e+00> : vector<128xf32>
    %97 = vector.multi_reduction <add>, %96, %cst_47 [0] : vector<32x128xf32> to vector<128xf32>
    %98 = vector.shape_cast %97 : vector<128xf32> to vector<1x128xf32>
    %cst_48 = arith.constant 3.125000e-02 : f32
    %99 = vector.broadcast %cst_48 : f32 to vector<1x128xf32>
    %100 = arith.mulf %98, %99 : vector<1x128xf32>
    %101 = arith.mulf %96, %96 : vector<32x128xf32>
    %cst_49 = arith.constant dense<0.000000e+00> : vector<128xf32>
    %102 = vector.multi_reduction <add>, %101, %cst_49 [0] : vector<32x128xf32> to vector<128xf32>
    %103 = vector.shape_cast %102 : vector<128xf32> to vector<1x128xf32>
    %cst_50 = arith.constant 3.125000e-02 : f32
    %104 = vector.broadcast %cst_50 : f32 to vector<1x128xf32>
    %105 = arith.mulf %103, %104 : vector<1x128xf32>
    %106 = arith.mulf %100, %100 : vector<1x128xf32>
    %107 = arith.subf %105, %106 : vector<1x128xf32>
    %cst_51 = arith.constant 0.000000e+00 : f32
    %108 = vector.broadcast %cst_51 : f32 to vector<1x128xf32>
    %109 = arith.maximumf %107, %108 : vector<1x128xf32>
    %c0_52 = arith.constant 0 : index
    %c0_53 = arith.constant 0 : index
    %110 = vector.load %arg12[%c0_52, %c0_53] : memref<1x128xf32, #tpu.memory_space<vmem>>, vector<1x128xf32>
    %cst_54 = arith.constant 9.99999974E-6 : f32
    %111 = vector.broadcast %cst_54 : f32 to vector<1x128xf32>
    %112 = arith.addf %109, %111 : vector<1x128xf32>
    %113 = math.rsqrt %112 : vector<1x128xf32>
    %114 = arith.mulf %110, %113 : vector<1x128xf32>
    %115 = vector.broadcast %100 : vector<1x128xf32> to vector<32x128xf32>
    %116 = arith.subf %96, %115 : vector<32x128xf32>
    %117 = vector.broadcast %114 : vector<1x128xf32> to vector<32x128xf32>
    %118 = arith.mulf %116, %117 : vector<32x128xf32>
    %c0_55 = arith.constant 0 : index
    %c0_56 = arith.constant 0 : index
    %119 = vector.load %arg13[%c0_55, %c0_56] : memref<1x128xf32, #tpu.memory_space<vmem>>, vector<1x128xf32>
    %120 = vector.broadcast %119 : vector<1x128xf32> to vector<32x128xf32>
    %121 = arith.addf %118, %120 : vector<32x128xf32>
    %122 = vector.shape_cast %121 : vector<32x128xf32> to vector<2x16x128xf32>
    %123 = tpu.concatenate %46, %84, %122 in 2 : vector<2x16x128xf32>, vector<2x16x128xf32>, vector<2x16x128xf32> -> vector<2x16x384xf32>
    %124 = arith.truncf %123 : vector<2x16x384xf32> to vector<2x16x384xbf16>
    %125 = vector.shape_cast %124 : vector<2x16x384xbf16> to vector<32x384xbf16>
    %c0_57 = arith.constant 0 : index
    %c0_58 = arith.constant 0 : index
    %126 = vector.load %arg14[%c0_57, %c0_58] : memref<384x128xbf16, #tpu.memory_space<vmem>>, vector<384x128xbf16>
    %cst_59 = arith.constant dense<0.000000e+00> : vector<32x128xf32>
    %127 = tpu.matmul %125, %126, %cst_59 {dimension_numbers = #tpu.dot_dimension_numbers<[1], [0], [0], [1], [0, 0, 1, 1], [], []>} : vector<32x384xbf16>, vector<384x128xbf16>, vector<32x128xf32> -> vector<32x128xf32>
    %c0_60 = arith.constant 0 : index
    %c0_61 = arith.constant 0 : index
    %128 = vector.load %arg15[%c0_60, %c0_61] : memref<1x128xf32, #tpu.memory_space<vmem>>, vector<1x128xf32>
    %129 = vector.broadcast %128 : vector<1x128xf32> to vector<32x128xf32>
    %130 = arith.addf %127, %129 : vector<32x128xf32>
    %cst_62 = arith.constant 0.000000e+00 : f32
    %131 = vector.broadcast %cst_62 : f32 to vector<32x128xf32>
    %132 = arith.maximumf %130, %131 : vector<32x128xf32>
    %133 = vector.shape_cast %132 : vector<32x128xf32> to vector<2x16x128xf32>
    %c0_63 = arith.constant 0 : index
    %c0_64 = arith.constant 0 : index
    %c0_65 = arith.constant 0 : index
    %134 = vector.load %arg16[%c0_63, %c0_64, %c0_65] : memref<2x16x128xf32, #tpu.memory_space<vmem>>, vector<2x16x128xf32>
    tpu.vector_store %arg16[%c0_63, %c0_64, %c0_65], %133 {strides = array<i32>} : memref<2x16x128xf32, #tpu.memory_space<vmem>>, vector<2x16x128xf32>,
    return
  }
}

</mosaic_0001>

<bundles_post_ra>
// kernel: gnn_forward.1
= control target key start
LH: loop header
LB: loop body
LE: loop exit
PB: predicated region body
PF: predicated region fallthrough
CT: control target
= control target key end

     0   :  { %s2236_s0 = inlined_call_operand.vmem [shape: f32[2,16,128], index: 0, kind: input, shape index: {}]   ;;  %s2237_s1 = inlined_call_operand.vmem [shape: f32[2,16,16], index: 1, kind: input, shape index: {}]   ;;  %s2238_s2 = inlined_call_operand.vmem [shape: bf16[256,128], index: 2, kind: input, shape index: {}]   ;;  %s2239_s3 = inlined_call_operand.vmem [shape: f32[1,128], index: 3, kind: input, shape index: {}]   ;;  %s2240_s4 = inlined_call_operand.vmem [shape: f32[1,128], index: 4, kind: input, shape index: {}]   ;;  %s2241_s5 = inlined_call_operand.vmem [shape: f32[1,128], index: 5, kind: input, shape index: {}]   ;;  %s2242_s6 = inlined_call_operand.vmem [shape: bf16[256,128], index: 6, kind: input, shape index: {}]   ;;  %s2243_s7 = inlined_call_operand.vmem [shape: f32[1,128], index: 7, kind: input, shape index: {}]   ;;  %s2244_s8 = inlined_call_operand.vmem [shape: f32[1,128], index: 8, kind: input, shape index: {}]   ;;  %s2245_s9 = inlined_call_operand.vmem [shape: f32[1,128], index: 9, kind: input, shape index: {}]   ;;  %s2246_s10 = inlined_call_operand.vmem [shape: bf16[256,128], index: 10, kind: input, shape index: {}]   ;;  %s2247_s11 = inlined_call_operand.vmem [shape: f32[1,128], index: 11, kind: input, shape index: {}]   ;;  %s2248_s12 = inlined_call_operand.vmem [shape: f32[1,128], index: 12, kind: input, shape index: {}]   ;;  %s2249_s13 = inlined_call_operand.vmem [shape: f32[1,128], index: 13, kind: input, shape index: {}]   ;;  %s2250_s14 = inlined_call_operand.vmem [shape: bf16[384,128], index: 14, kind: input, shape index: {}]   ;;  %s2251_s15 = inlined_call_operand.vmem [shape: f32[1,128], index: 15, kind: input, shape index: {}]   ;;  %s2252_s16 = inlined_call_operand.hbm [shape: f32[2,16,128], index: 16, kind: output, shape index: {}]  }
   0x1   :  { %2254 = sst [smem:[#allocation5_spill]] %s2236_s0 }
   0x2   :  { %v55_v0 = vld [vmem:[%s2237_s1] sm:$0xff]  ;;  %vm59_vm0 = vcmask 130048   ;;  %v57_v1 = vld [vmem:[%s2237_s1 + $0x10] sm:$0xff]  ;;  %v56_v2 = vld [vmem:[%s2237_s1 + $0x8] sm:$0xff]  ;;  %s2255_s0 = sld [smem:[#allocation5_spill]]  ;;  %v1799_v11 = vmov 0.0  }
   0x3   :  { %v60_v3 = vsel %vm59_vm0, %v55_v0, 0.0  ;;  %v66_v4 = vsel %vm59_vm0, %v57_v1, 0.0  ;;  %v58_v5 = vld [vmem:[%s2237_s1 + $0x18] sm:$0xff]  ;;  %v63_v6 = vsel %vm59_vm0, %v56_v2, 0.0  ;;  %1628 = vmatprep.subr.bf16.mxu0 %v1799_v11  ;;  %1640 = vmatprep.subr.bf16.mxu1 %v1799_v11  ;;  %vm1800_vm1 = vmmov 0  }
   0x4   :  { %61 = vadd.xlane.f32.xlu0 %v60_v3  ;;  %67 = vadd.xlane.f32.xlu1 %v66_v4  ;;  %v69_v7 = vsel %vm59_vm0, %v58_v5, 0.0 }
   0x5   :  { %1630 = vmatprep.mubr.msk.bf16.mxu0 %vm1800_vm1, %v1799_v11  ;;  %1642 = vmatprep.mubr.msk.bf16.mxu1 %vm1800_vm1, %v1799_v11 }
   0x8   :  { %64 = vadd.xlane.f32.xlu0 %v63_v6  ;;  %70 = vadd.xlane.f32.xlu1 %v69_v7  ;;  %v86_v8 = vld [vmem:[%s2255_s0] sm:$0xff]  ;;  %v87_v9 = vld [vmem:[%s2255_s0 + $0x8] sm:$0xff] }
   0x9   :  { %v90_v10 = vpack.c.bf16 %v87_v9, %v86_v8 }
   0xb   :  { %1629 = vmatpush3.bf16.msra.mxu0 %v90_v10 }
   0xc   :  { %1634 = vmatprep.subr.bf16.mxu0 %v1799_v11 }
   0xd   :  { %21 = vsyncpa [#allocation3], 0  ;;  %v88_v21 = vld [vmem:[%s2255_s0 + $0x10] sm:$0xff]  ;;  %v89_v22 = vld [vmem:[%s2255_s0 + $0x18] sm:$0xff] }
   0xe   :  { %v91_v26 = vpack.c.bf16 %v89_v22, %v88_v21  ;;  %v1689_v29 = vld [vmem:[%s2238_s2 + $0x40] sm:$0xff]   ;;  %v1691_v35 = vld [vmem:[%s2238_s2 + $0x48] sm:$0xff]   ;;  %v1693_v37 = vld [vmem:[%s2238_s2 + $0x50] sm:$0xff]  }
   0xf   :  { %v1690_v33 = vld [vmem:[%s2238_s2] sm:$0xff]   ;;  %v1692_v36 = vld [vmem:[%s2238_s2 + $0x8] sm:$0xff]   ;;  %v1694_v38 = vld [vmem:[%s2238_s2 + $0x10] sm:$0xff]  }
  0x10   :  { %v1695_v39 = vld [vmem:[%s2238_s2 + $0x58] sm:$0xff]   ;;  %v1697_v41 = vld [vmem:[%s2238_s2 + $0x60] sm:$0xff]   ;;  %v1699_v43 = vld [vmem:[%s2238_s2 + $0x68] sm:$0xff]  }
  0x11   :  { %v1696_v40 = vld [vmem:[%s2238_s2 + $0x18] sm:$0xff]   ;;  %v1698_v42 = vld [vmem:[%s2238_s2 + $0x20] sm:$0xff]   ;;  %v1700_v44 = vld [vmem:[%s2238_s2 + $0x28] sm:$0xff]  }
  0x12   :  { %v1701_v45 = vld [vmem:[%s2238_s2 + $0x70] sm:$0xff]   ;;  %v1703_v47 = vld [vmem:[%s2238_s2 + $0x78] sm:$0xff]   ;;  %v1411_v60 = vld [vmem:[%s2239_s3] ss:$0 sm:$0xff] }
  0x13   :  { %v1702_v46 = vld [vmem:[%s2238_s2 + $0x30] sm:$0xff]   ;;  %v1704_v48 = vld [vmem:[%s2238_s2 + $0x38] sm:$0xff]  }
  0x91   :  { %v62_v12 = vpop.xlane.xlu0 %61  ;;  %v68_v13 = vpop.xlane.xlu1 %67 }
  0x92   :  { %v72_v14 = vmax.f32 %v62_v12, 1.0  ;;  %v74_v18 = vmax.f32 %v68_v13, 1.0 }
  0x94   :  { %1761 = vrcp.f32 %v72_v14 }
  0x95   :  { %v65_v15 = vpop.xlane.xlu0 %64  ;;  %v71_v16 = vpop.xlane.xlu1 %70 }
  0x96   :  { %v73_v17 = vmax.f32 %v65_v15, 1.0  ;;  %v75_v19 = vmax.f32 %v71_v16, 1.0 }
  0x98   :  { %1763 = vrcp.f32 %v73_v17 }
  0x99   :  { %1765 = vrcp.f32 %v74_v18 }
  0x9a   :  { %1767 = vrcp.f32 %v75_v19 }
  0x9e   :  { %v1762_v20 = vpop.eup %1761 }
  0x9f   :  { %v77_v24 = vmul.f32 %v1762_v20, %v55_v0 }
  0xa2   :  { %v1764_v23 = vpop.eup %1763 }
  0xa3   :  { %v79_v25 = vmul.f32 %v1764_v23, %v56_v2  ;;  %v1766_v27 = vpop.eup %1765 }
  0xa4   :  { %v1768_v30 = vpop.eup %1767  ;;  %v81_v31 = vmul.f32 %v1766_v27, %v57_v1 }
  0xa5   :  { %v1924_v28 = vpack.c.bf16 %v79_v25, %v77_v24  ;;  %v83_v32 = vmul.f32 %v1768_v30, %v58_v5 }
  0xa7   :  { %1631 = vmatmul.mubr.msk.bf16.vlgmr.msra.gmra.mrb[0].mxu0 %vm59_vm0, %v1924_v28  ;;  %v1936_v34 = vpack.c.bf16 %v83_v32, %v81_v31 }
  0xa8   :  { %1635 = vmatpush3.bf16.msra.mxu0 %v91_v26  ;;  %1636 = vmatprep.mubr.msk.bf16.mxu0 %vm1800_vm1, %v1799_v11 }
  0xa9   :  { %1498 = vmatprep.subr.bf16.mxu0 %v1689_v29 }
  0xaf   :  { %1637 = vmatmul.mubr.msk.bf16.vlgmr.msra.gmra.mrb[4].mxu0 %vm59_vm0, %v1936_v34 }
  0xb0   :  { %1499 = vmatpush3.bf16.msra.mxu0 %v1690_v33  ;;  %349 = vmatprep.mubr.bf16.mxu0 %v90_v10 }
  0xb1   :  { %1500 = vmatprep.subr.bf16.mxu0 %v1691_v35 }
  0xb4   :  { %1501 = vmatpush3.bf16.msra.mxu0 %v1692_v36 }
  0xb5   :  { %1502 = vmatprep.subr.bf16.mxu0 %v1693_v37 }
  0xb8   :  { %1503 = vmatpush3.bf16.msra.mxu0 %v1694_v38 }
  0xb9   :  { %1504 = vmatprep.subr.bf16.mxu0 %v1695_v39 }
  0xbc   :  { %1505 = vmatpush3.bf16.msra.mxu0 %v1696_v40 }
  0xbd   :  { %1506 = vmatprep.subr.bf16.mxu0 %v1697_v41 }
  0xc0   :  { %1507 = vmatpush3.bf16.msra.mxu0 %v1698_v42 }
  0xc1   :  { %1508 = vmatprep.subr.bf16.mxu0 %v1699_v43 }
  0xc4   :  { %1509 = vmatpush3.bf16.msra.mxu0 %v1700_v44 }
  0xc5   :  { %1510 = vmatprep.subr.bf16.mxu0 %v1701_v45 }
  0xc8   :  { %1511 = vmatpush3.bf16.msra.mxu0 %v1702_v46 }
  0xc9   :  { %1512 = vmatprep.subr.bf16.mxu0 %v1703_v47 }
  0xcc   :  { %1513 = vmatpush3.bf16.msra.mxu0 %v1704_v48 }
  0xcd   :  { %1652 = vmatprep.subr.bf16.mxu0 %v1799_v11 }
 0x17a   :  { %v129_v49 = vpop.f32.mrb[0].mxu0 }
 0x17b   :  { %v1632_v50 = vpop.f32.mrb[1].mxu0 }
 0x17c   :  { %v132_v51 = vpop.f32.mrb[2].mxu0 }
 0x17d   :  { %v180_v52 = vpack.c.bf16 %v132_v51, %v129_v49  ;;  %v1633_v53 = vpop.f32.mrb[3].mxu0  ;;  %v406_v51 = vlaneseq }
 0x17e   :  { %v397_v53 = vld [vmem:[%s2240_s4] sm:$0x1] }
 0x17f   :  { %350 = vmatmul.mubr.bf16.vlgmr.msra.gmra.mrb[8].mxu0 %v180_v52  ;;  %v407_v52 = vshrl.u32 %v406_v51, 7 }
 0x180   :  { %357 = vmatprep.mubr.bf16.mxu0 %v91_v26 }
 0x182   :  { %v173_v54 = vpop.f32.mrb[4].mxu0 }
 0x183   :  { %v1638_v55 = vpop.f32.mrb[5].mxu0 }
 0x184   :  { %v176_v56 = vpop.f32.mrb[6].mxu0 }
 0x185   :  { %v181_v57 = vpack.c.bf16 %v176_v56, %v173_v54  ;;  %v1639_v58 = vpop.f32.mrb[7].mxu0  ;;  %v1991_v54 = vsub.s32 0, %v407_v52 }
 0x186   :  { %v1428_v58 = vld [vmem:[%s2241_s5] ss:$0 sm:$0xff] }
 0x187   :  { %358 = vmatmul.mubr.bf16.gmra.mrb[12].mxu0 %v181_v57 }
 0x188   :  { %1654 = vmatprep.mubr.msk.bf16.mxu0 %vm1800_vm1, %v1799_v11 }
 0x252   :  { %v1514_v59 = vpop.f32.mrb[8].mxu0 }
 0x253   :  { %v1515_v61 = vpop.f32.mrb[9].mxu0 }
 0x254   :  { %v1516_v62 = vadd.f32 %v1515_v61, %v1514_v59  ;;  %v1517_v63 = vpop.f32.mrb[10].mxu0 }
 0x255   :  { %v1518_v0 = vpop.f32.mrb[11].mxu0 }
 0x256   :  { %v352_v1 = vadd.f32 %v1516_v62, %v1411_v60  ;;  %v1519_v2 = vadd.f32 %v1518_v0, %v1517_v63 }
 0x258   :  { %v366_v3 = vmax.f32 %v352_v1, 0.0  ;;  %v355_v4 = vadd.f32 %v1519_v2, %v1411_v60 }
 0x25a   :  { %v367_v5 = vmax.f32 %v355_v4, 0.0  ;;  %v1520_v6 = vpop.f32.mrb[12].mxu0  ;;  %v380_v8 = vmul.f32 %v366_v3, %v366_v3 }
 0x25b   :  { %v1521_v7 = vpop.f32.mrb[13].mxu0 }
 0x25c   :  { %v370_v9 = vadd.f32 %v367_v5, %v366_v3  ;;  %v381_v10 = vmul.f32 %v367_v5, %v367_v5  ;;  %v1522_v12 = vadd.f32 %v1521_v7, %v1520_v6  ;;  %v1523_v13 = vpop.f32.mrb[14].mxu0  ;;  %v1706_v6 = vld [vmem:[%s2242_s6] sm:$0xff]   ;;  %v1707_v7 = vld [vmem:[%s2242_s6 + $0x48] sm:$0xff]  }
 0x25d   :  { %v1524_v14 = vpop.f32.mrb[15].mxu0 }
 0x25e   :  { %v384_v15 = vadd.f32 %v381_v10, %v380_v8  ;;  %v360_v16 = vadd.f32 %v1522_v12, %v1411_v60  ;;  %v1525_v17 = vadd.f32 %v1524_v14, %v1523_v13  ;;  %v1708_v8 = vld [vmem:[%s2242_s6 + $0x8] sm:$0xff]   ;;  %v1710_v10 = vld [vmem:[%s2242_s6 + $0x10] sm:$0xff]   ;;  %v1711_v12 = vld [vmem:[%s2242_s6 + $0x58] sm:$0xff]  }
 0x25f   :  { %v1712_v13 = vld [vmem:[%s2242_s6 + $0x18] sm:$0xff]   ;;  %v1713_v14 = vld [vmem:[%s2242_s6 + $0x60] sm:$0xff]  }
 0x260   :  { %v368_v18 = vmax.f32 %v360_v16, 0.0  ;;  %v363_v19 = vadd.f32 %v1525_v17, %v1411_v60  ;;  %v1715_v16 = vld [vmem:[%s2242_s6 + $0x68] sm:$0xff]  }
 0x261   :  { %v1716_v17 = vld [vmem:[%s2242_s6 + $0x28] sm:$0xff]  }
 0x262   :  { %v371_v20 = vadd.f32 %v370_v9, %v368_v18  ;;  %v382_v21 = vmul.f32 %v368_v18, %v368_v18  ;;  %v369_v22 = vmax.f32 %v363_v19, 0.0  ;;  %v1709_v9 = vld [vmem:[%s2242_s6 + $0x50] sm:$0xff]  }
 0x263   :  { %v1718_v19 = vld [vmem:[%s2242_s6 + $0x30] sm:$0xff]  }
 0x264   :  { %v385_v23 = vadd.f32 %v384_v15, %v382_v21  ;;  %v372_v24 = vadd.f32 %v371_v20, %v369_v22  ;;  %v383_v25 = vmul.f32 %v369_v22, %v369_v22  ;;  %v1714_v15 = vld [vmem:[%s2242_s6 + $0x20] sm:$0xff]   ;;  %v1719_v20 = vld [vmem:[%s2242_s6 + $0x78] sm:$0xff]  }
 0x265   :  { %v1720_v21 = vld [vmem:[%s2242_s6 + $0x38] sm:$0xff]  }
 0x266   :  { %v373_v26 = vrot.slane %v372_v24, 4  ;;  %v386_v27 = vadd.f32 %v385_v23, %v383_v25 }
 0x268   :  { %v374_v29 = vadd.f32 %v373_v26, %v372_v24  ;;  %v387_v30 = vrot.slane %v386_v27, 4 }
 0x26a   :  { %v375_v31 = vrot.slane %v374_v29, 2  ;;  %v388_v32 = vadd.f32 %v387_v30, %v386_v27 }
 0x26c   :  { %v376_v33 = vadd.f32 %v375_v31, %v374_v29  ;;  %v389_v35 = vrot.slane %v388_v32, 2 }
 0x26e   :  { %v377_v36 = vrot.slane %v376_v33, 1  ;;  %v390_v37 = vadd.f32 %v389_v35, %v388_v32  ;;  %v1738_v35 = vld [vmem:[%s2246_s10] sm:$0xff]  }
 0x270   :  { %v378_v38 = vadd.f32 %v377_v36, %v376_v33  ;;  %v391_v39 = vrot.slane %v390_v37, 1  ;;  %v1737_v33 = vld [vmem:[%s2246_s10 + $0x40] sm:$0xff]   ;;  %v1739_v36 = vld [vmem:[%s2246_s10 + $0x48] sm:$0xff]  }
 0x272   :  { %v379_v40 = vmul.f32 0.03125, %v378_v38  ;;  %v392_v41 = vadd.f32 %v391_v39, %v390_v37  ;;  %v1740_v37 = vld [vmem:[%s2246_s10 + $0x8] sm:$0xff]   ;;  %v1741_v38 = vld [vmem:[%s2246_s10 + $0x50] sm:$0xff]  }
 0x273   :  { %v1742_v39 = vld [vmem:[%s2246_s10 + $0x10] sm:$0xff]  }
 0x274   :  { %v393_v42 = vmul.f32 0.03125, %v392_v41  ;;  %v394_v43 = vmul.f32 %v379_v40, %v379_v40  ;;  %v404_v44 = vsub.f32 %v369_v22, %v379_v40  ;;  %v401_v45 = vsub.f32 %v366_v3, %v379_v40  ;;  %v1744_v41 = vld [vmem:[%s2246_s10 + $0x18] sm:$0xff]  }
 0x275   :  { %v402_v46 = vsub.f32 %v367_v5, %v379_v40  ;;  %v403_v47 = vsub.f32 %v368_v18, %v379_v40  ;;  %v1705_v5 = vld [vmem:[%s2242_s6 + $0x40] sm:$0xff]   ;;  %v1717_v18 = vld [vmem:[%s2242_s6 + $0x70] sm:$0xff]   ;;  %v1743_v40 = vld [vmem:[%s2246_s10 + $0x58] sm:$0xff]  }
 0x276   :  { %v395_v48 = vsub.f32 %v393_v42, %v394_v43  ;;  %v1745_v42 = vld [vmem:[%s2246_s10 + $0x60] sm:$0xff]  }
 0x278   :  { %v396_v49 = vmax.f32 %v395_v48, 0.0 }
 0x27a   :  { %v398_v50 = vadd.f32 1e-05, %v396_v49  ;;  %v1747_v49 = vld [vmem:[%s2246_s10 + $0x68] sm:$0xff]  }
 0x27c   :  { %1769 = vrsqrt.f32 %v398_v50 }
 0x286   :  { %v1770_v55 = vpop.eup %1769 }
 0x287   :  { %v400_v56 = vmul.f32 %v1770_v55, %v397_v53  ;;  %v1748_v53 = vld [vmem:[%s2246_s10 + $0x28] sm:$0xff]  }
 0x289   :  { %v409_v57 = vrot.slane %v400_v56, %v1991_v54 }
 0x28b   :  { %v414_v59 = vmul.f32 %v409_v57, %v404_v44  ;;  %v411_v60 = vmul.f32 %v409_v57, %v401_v45  ;;  %v412_v61 = vmul.f32 %v409_v57, %v402_v46  ;;  %v413_v62 = vmul.f32 %v409_v57, %v403_v47  ;;  %v1431_v44 = vld [vmem:[%s2243_s7] ss:$0 sm:$0xff]  ;;  %v1749_v57 = vld [vmem:[%s2246_s10 + $0x70] sm:$0xff]  }
 0x28c   :  { %v1746_v46 = vld [vmem:[%s2246_s10 + $0x20] sm:$0xff]  }
 0x28d   :  { %v422_v63 = vadd.f32 %v1428_v58, %v411_v60  ;;  %v423_v0 = vadd.f32 %v1428_v58, %v412_v61  ;;  %v424_v1 = vadd.f32 %v1428_v58, %v413_v62  ;;  %v425_v2 = vadd.f32 %v1428_v58, %v414_v59  ;;  %v1750_v61 = vld [vmem:[%s2246_s10 + $0x30] sm:$0xff]  }
 0x28f   :  { %v1997_v3 = vpack.c.bf16 %v423_v0, %v422_v63  ;;  %v1999_v4 = vpack.c.bf16 %v425_v2, %v424_v1 }
 0x291   :  { %1641 = vmatpush3.bf16.msra.mxu1 %v1997_v3 }
 0x292   :  { %1646 = vmatprep.subr.bf16.mxu1 %v1799_v11 }
 0x294   :  { %1643 = vmatmul.mubr.msk.bf16.vlgmr.msra.gmra.mrb[0].mxu1 %vm59_vm0, %v1924_v28 }
 0x295   :  { %1647 = vmatpush3.bf16.msra.mxu1 %v1999_v4  ;;  %1648 = vmatprep.mubr.msk.bf16.mxu1 %vm1800_vm1, %v1799_v11 }
 0x296   :  { %1530 = vmatprep.subr.bf16.mxu1 %v1705_v5 }
 0x29c   :  { %1649 = vmatmul.mubr.msk.bf16.vlgmr.msra.gmra.mrb[4].mxu1 %vm59_vm0, %v1936_v34 }
 0x29d   :  { %679 = vmatprep.mubr.bf16.mxu1 %v1997_v3  ;;  %1531 = vmatpush3.bf16.msra.mxu1 %v1706_v6 }
 0x29e   :  { %1532 = vmatprep.subr.bf16.mxu1 %v1707_v7 }
 0x2a1   :  { %1533 = vmatpush3.bf16.msra.mxu1 %v1708_v8 }
 0x2a2   :  { %1534 = vmatprep.subr.bf16.mxu1 %v1709_v9 }
 0x2a5   :  { %1535 = vmatpush3.bf16.msra.mxu1 %v1710_v10 }
 0x2a6   :  { %1536 = vmatprep.subr.bf16.mxu1 %v1711_v12 }
 0x2a9   :  { %1537 = vmatpush3.bf16.msra.mxu1 %v1712_v13 }
 0x2aa   :  { %1538 = vmatprep.subr.bf16.mxu1 %v1713_v14 }
 0x2ad   :  { %1539 = vmatpush3.bf16.msra.mxu1 %v1714_v15 }
 0x2ae   :  { %1540 = vmatprep.subr.bf16.mxu1 %v1715_v16 }
 0x2b1   :  { %1541 = vmatpush3.bf16.msra.mxu1 %v1716_v17 }
 0x2b2   :  { %1542 = vmatprep.subr.bf16.mxu1 %v1717_v18 }
 0x2b5   :  { %1543 = vmatpush3.bf16.msra.mxu1 %v1718_v19 }
 0x2b6   :  { %1544 = vmatprep.subr.bf16.mxu1 %v1719_v20 }
 0x2b9   :  { %1545 = vmatpush3.bf16.msra.mxu1 %v1720_v21 }
 0x2ba   :  { %1562 = vmatprep.subr.bf16.mxu1 %v1737_v33 }
 0x367   :  { %v462_v22 = vpop.f32.mrb[0].mxu1 }
 0x368   :  { %v1644_v23 = vpop.f32.mrb[1].mxu1 }
 0x369   :  { %v465_v24 = vpop.f32.mrb[2].mxu1 }
 0x36a   :  { %v510_v25 = vpack.c.bf16 %v465_v24, %v462_v22  ;;  %v1645_v26 = vpop.f32.mrb[3].mxu1 }
 0x36c   :  { %680 = vmatmul.mubr.bf16.vlgmr.msra.gmra.mrb[8].mxu1 %v510_v25 }
 0x36d   :  { %687 = vmatprep.mubr.bf16.mxu1 %v1999_v4  ;;  %1563 = vmatpush3.bf16.msra.mxu1 %v1738_v35 }
 0x36e   :  { %1564 = vmatprep.subr.bf16.mxu1 %v1739_v36 }
 0x36f   :  { %v503_v27 = vpop.f32.mrb[4].mxu1 }
 0x370   :  { %v1650_v29 = vpop.f32.mrb[5].mxu1 }
 0x371   :  { %v506_v30 = vpop.f32.mrb[6].mxu1  ;;  %1565 = vmatpush3.bf16.msra.mxu1 %v1740_v37 }
 0x372   :  { %v511_v31 = vpack.c.bf16 %v506_v30, %v503_v27  ;;  %v1651_v32 = vpop.f32.mrb[7].mxu1  ;;  %1566 = vmatprep.subr.bf16.mxu1 %v1741_v38 }
 0x374   :  { %688 = vmatmul.mubr.bf16.gmra.mrb[12].mxu1 %v511_v31 }
 0x375   :  { %1567 = vmatpush3.bf16.msra.mxu1 %v1742_v39 }
 0x376   :  { %1568 = vmatprep.subr.bf16.mxu1 %v1743_v40 }
 0x379   :  { %1569 = vmatpush3.bf16.msra.mxu1 %v1744_v41 }
 0x37a   :  { %1570 = vmatprep.subr.bf16.mxu1 %v1745_v42 }
 0x37d   :  { %1571 = vmatpush3.bf16.msra.mxu1 %v1746_v46 }
 0x37e   :  { %1572 = vmatprep.subr.bf16.mxu1 %v1747_v49 }
 0x381   :  { %1573 = vmatpush3.bf16.msra.mxu1 %v1748_v53 }
 0x382   :  { %1574 = vmatprep.subr.bf16.mxu1 %v1749_v57 }
 0x385   :  { %1575 = vmatpush3.bf16.msra.mxu1 %v1750_v61  ;;  %v1723_v61 = vld [vmem:[%s2250_s14 + $0x48] sm:$0xff]  }
 0x43f   :  { %v1546_v43 = vpop.f32.mrb[8].mxu1 }
 0x440   :  { %v1547_v45 = vpop.f32.mrb[9].mxu1 }
 0x441   :  { %v1548_v47 = vadd.f32 %v1547_v45, %v1546_v43  ;;  %v1549_v48 = vpop.f32.mrb[10].mxu1  ;;  %v727_v43 = vld [vmem:[%s2244_s8] sm:$0x1] }
 0x442   :  { %v1550_v50 = vpop.f32.mrb[11].mxu1 }
 0x443   :  { %v682_v51 = vadd.f32 %v1548_v47, %v1431_v44  ;;  %v1551_v52 = vadd.f32 %v1550_v50, %v1549_v48  ;;  %v1448_v47 = vld [vmem:[%s2245_s9] ss:$0 sm:$0xff] }
 0x445   :  { %v696_v55 = vmax.f32 %v682_v51, 0.0  ;;  %v685_v56 = vadd.f32 %v1551_v52, %v1431_v44 }
 0x447   :  { %v697_v58 = vmax.f32 %v685_v56, 0.0  ;;  %v1552_v59 = vpop.f32.mrb[12].mxu1  ;;  %v710_v62 = vmul.f32 %v696_v55, %v696_v55 }
 0x448   :  { %v1553_v60 = vpop.f32.mrb[13].mxu1 }
 0x449   :  { %v700_v63 = vadd.f32 %v697_v58, %v696_v55  ;;  %v711_v0 = vmul.f32 %v697_v58, %v697_v58  ;;  %v1554_v1 = vadd.f32 %v1553_v60, %v1552_v59  ;;  %v1555_v2 = vpop.f32.mrb[14].mxu1  ;;  %v1721_v59 = vld [vmem:[%s2250_s14 + $0x40] sm:$0xff]  }
 0x44a   :  { %v1556_v5 = vpop.f32.mrb[15].mxu1  ;;  %v1722_v60 = vld [vmem:[%s2250_s14] sm:$0xff]  }
 0x44b   :  { %v714_v6 = vadd.f32 %v711_v0, %v710_v62  ;;  %v690_v7 = vadd.f32 %v1554_v1, %v1431_v44  ;;  %v1557_v8 = vadd.f32 %v1556_v5, %v1555_v2  ;;  %v1726_v62 = vld [vmem:[%s2250_s14 + $0x10] sm:$0xff]   ;;  %v1729_v0 = vld [vmem:[%s2250_s14 + $0x60] sm:$0xff]   ;;  %v1731_v2 = vld [vmem:[%s2250_s14 + $0x68] sm:$0xff]  }
 0x44c   :  { %v1730_v1 = vld [vmem:[%s2250_s14 + $0x20] sm:$0xff]   ;;  %v1732_v5 = vld [vmem:[%s2250_s14 + $0x28] sm:$0xff]  }
 0x44d   :  { %v698_v9 = vmax.f32 %v690_v7, 0.0  ;;  %v693_v10 = vadd.f32 %v1557_v8, %v1431_v44  ;;  %v1734_v7 = vld [vmem:[%s2250_s14 + $0x30] sm:$0xff]   ;;  %v1735_v8 = vld [vmem:[%s2250_s14 + $0x78] sm:$0xff]  }
 0x44f   :  { %v701_v12 = vadd.f32 %v700_v63, %v698_v9  ;;  %v712_v13 = vmul.f32 %v698_v9, %v698_v9  ;;  %v699_v14 = vmax.f32 %v693_v10, 0.0  ;;  %v1728_v63 = vld [vmem:[%s2250_s14 + $0x18] sm:$0xff]  }
 0x450   :  { %v1751_v10 = vld [vmem:[%s2246_s10 + $0x78] sm:$0xff]  }
 0x451   :  { %v715_v15 = vadd.f32 %v714_v6, %v712_v13  ;;  %v702_v16 = vadd.f32 %v701_v12, %v699_v14  ;;  %v713_v17 = vmul.f32 %v699_v14, %v699_v14  ;;  %v1733_v6 = vld [vmem:[%s2250_s14 + $0x70] sm:$0xff]   ;;  %v1752_v12 = vld [vmem:[%s2246_s10 + $0x38] sm:$0xff]   ;;  %1576 = vmatprep.subr.bf16.mxu1 %v1751_v10 }
 0x452   :  { %1577 = vmatpush3.bf16.msra.mxu1 %v1752_v12 }
 0x453   :  { %v703_v18 = vrot.slane %v702_v16, 4  ;;  %v716_v19 = vadd.f32 %v715_v15, %v713_v17 }
 0x455   :  { %v704_v20 = vadd.f32 %v703_v18, %v702_v16  ;;  %v717_v21 = vrot.slane %v716_v19, 4 }
 0x457   :  { %v705_v22 = vrot.slane %v704_v20, 2  ;;  %v718_v23 = vadd.f32 %v717_v21, %v716_v19 }
 0x459   :  { %v706_v24 = vadd.f32 %v705_v22, %v704_v20  ;;  %v719_v25 = vrot.slane %v718_v23, 2 }
 0x45b   :  { %v707_v26 = vrot.slane %v706_v24, 1  ;;  %v720_v27 = vadd.f32 %v719_v25, %v718_v23 }
 0x45d   :  { %v708_v29 = vadd.f32 %v707_v26, %v706_v24  ;;  %v721_v30 = vrot.slane %v720_v27, 1 }
 0x45f   :  { %v709_v31 = vmul.f32 0.03125, %v708_v29  ;;  %v722_v32 = vadd.f32 %v721_v30, %v720_v27 }
 0x461   :  { %v723_v33 = vmul.f32 0.03125, %v722_v32  ;;  %v724_v35 = vmul.f32 %v709_v31, %v709_v31  ;;  %v734_v36 = vsub.f32 %v699_v14, %v709_v31  ;;  %v731_v37 = vsub.f32 %v696_v55, %v709_v31 }
 0x462   :  { %v732_v38 = vsub.f32 %v697_v58, %v709_v31  ;;  %v733_v39 = vsub.f32 %v698_v9, %v709_v31  ;;  %v1736_v9 = vld [vmem:[%s2250_s14 + $0x38] sm:$0xff]  }
 0x463   :  { %v725_v40 = vsub.f32 %v723_v33, %v724_v35  ;;  %v1753_v35 = vld [vmem:[%s2250_s14 + $0x80] sm:$0xff]  }
 0x464   :  { %1664 = vmatprep.subr.bf16.mxu1 %v1753_v35 }
 0x465   :  { %v726_v41 = vmax.f32 %v725_v40, 0.0  ;;  %v1758_v40 = vld [vmem:[%s2250_s14 + $0xa8] sm:$0xff]  }
 0x467   :  { %v728_v42 = vadd.f32 1e-05, %v726_v41  ;;  %v1759_v41 = vld [vmem:[%s2250_s14 + $0xb0] sm:$0xff]  }
 0x469   :  { %1771 = vrsqrt.f32 %v728_v42  ;;  %v1760_v42 = vld [vmem:[%s2250_s14 + $0xb8] sm:$0xff]  }
 0x473   :  { %v1772_v44 = vpop.eup %1771 }
 0x474   :  { %v730_v45 = vmul.f32 %v1772_v44, %v727_v43  ;;  %v1451_v44 = vld [vmem:[%s2247_s11] ss:$0 sm:$0xff] }
 0x476   :  { %v739_v46 = vrot.slane %v730_v45, %v1991_v54 }
 0x478   :  { %v744_v48 = vmul.f32 %v739_v46, %v734_v36  ;;  %v741_v49 = vmul.f32 %v739_v46, %v731_v37  ;;  %v742_v50 = vmul.f32 %v739_v46, %v732_v38  ;;  %v743_v51 = vmul.f32 %v739_v46, %v733_v39  ;;  %v1754_v36 = vld [vmem:[%s2250_s14 + $0x88] sm:$0xff]   ;;  %v1755_v37 = vld [vmem:[%s2250_s14 + $0x90] sm:$0xff]   ;;  %v1756_v38 = vld [vmem:[%s2250_s14 + $0x98] sm:$0xff]  }
 0x479   :  { %v1757_v39 = vld [vmem:[%s2250_s14 + $0xa0] sm:$0xff]  }
 0x47a   :  { %v752_v52 = vadd.f32 %v1448_v47, %v741_v49  ;;  %v753_v53 = vadd.f32 %v1448_v47, %v742_v50  ;;  %v754_v55 = vadd.f32 %v1448_v47, %v743_v51  ;;  %v755_v56 = vadd.f32 %v1448_v47, %v744_v48 }
 0x47c   :  { %v756_v57 = vpack.c.bf16 %v753_v53, %v752_v52  ;;  %v757_v58 = vpack.c.bf16 %v755_v56, %v754_v55 }
 0x47e   :  { %1653 = vmatpush3.bf16.msra.mxu0 %v756_v57  ;;  %1009 = vmatprep.mubr.bf16.mxu1 %v756_v57 }
 0x47f   :  { %1658 = vmatprep.subr.bf16.mxu0 %v1799_v11 }
 0x481   :  { %1655 = vmatmul.mubr.msk.bf16.vlgmr.msra.gmra.mrb[16].mxu0 %vm59_vm0, %v1924_v28  ;;  %v1724_v28 = vld [vmem:[%s2250_s14 + $0x8] sm:$0xff]  }
 0x482   :  { %1659 = vmatpush3.bf16.msra.mxu0 %v757_v58  ;;  %1660 = vmatprep.mubr.msk.bf16.mxu0 %vm1800_vm1, %v1799_v11  ;;  %v1725_v11 = vld [vmem:[%s2250_s14 + $0x50] sm:$0xff]  }
 0x483   :  { %1590 = vmatprep.subr.bf16.mxu0 %v1721_v59 }
 0x489   :  { %1661 = vmatmul.mubr.msk.bf16.vlgmr.msra.gmra.mrb[20].mxu0 %vm59_vm0, %v1936_v34  ;;  %v1727_v34 = vld [vmem:[%s2250_s14 + $0x58] sm:$0xff]  }
 0x48a   :  { %1591 = vmatpush3.bf16.msra.mxu0 %v1722_v60  ;;  %1319 = vmatprep.mubr.bf16.mxu0 %v756_v57 }
 0x48b   :  { %1592 = vmatprep.subr.bf16.mxu0 %v1723_v61 }
 0x48e   :  { %1593 = vmatpush3.bf16.msra.mxu0 %v1724_v28 }
 0x48f   :  { %1594 = vmatprep.subr.bf16.mxu0 %v1725_v11 }
 0x492   :  { %1595 = vmatpush3.bf16.msra.mxu0 %v1726_v62 }
 0x493   :  { %1596 = vmatprep.subr.bf16.mxu0 %v1727_v34 }
 0x496   :  { %1597 = vmatpush3.bf16.msra.mxu0 %v1728_v63 }
 0x497   :  { %1598 = vmatprep.subr.bf16.mxu0 %v1729_v0 }
 0x49a   :  { %1599 = vmatpush3.bf16.msra.mxu0 %v1730_v1 }
 0x49b   :  { %1600 = vmatprep.subr.bf16.mxu0 %v1731_v2 }
 0x49e   :  { %1601 = vmatpush3.bf16.msra.mxu0 %v1732_v5 }
 0x49f   :  { %1602 = vmatprep.subr.bf16.mxu0 %v1733_v6 }
 0x4a2   :  { %1603 = vmatpush3.bf16.msra.mxu0 %v1734_v7 }
 0x4a3   :  { %1604 = vmatprep.subr.bf16.mxu0 %v1735_v8 }
 0x4a6   :  { %1605 = vmatpush3.bf16.msra.mxu0 %v1736_v9 }
 0x4a9   :  { %1320 = vmatmul.mubr.bf16.vlgmr.msra.gmra.mrb[24].mxu0 %v1997_v3 }
 0x4aa   :  { %1327 = vmatprep.mubr.bf16.mxu0 %v757_v58 }
 0x4b1   :  { %1328 = vmatmul.mubr.bf16.gmra.mrb[28].mxu0 %v1999_v4 }
 0x554   :  { %v792_v13 = vpop.f32.mrb[16].mxu0 }
 0x555   :  { %v1656_v14 = vpop.f32.mrb[17].mxu0 }
 0x556   :  { %v795_v15 = vpop.f32.mrb[18].mxu0 }
 0x557   :  { %v840_v16 = vpack.c.bf16 %v795_v15, %v792_v13  ;;  %v1657_v17 = vpop.f32.mrb[19].mxu0 }
 0x559   :  { %1010 = vmatmul.mubr.bf16.vlgmr.msra.gmra.mrb[16].mxu1 %v840_v16 }
 0x55a   :  { %1017 = vmatprep.mubr.bf16.mxu1 %v757_v58  ;;  %1665 = vmatpush3.bf16.msra.mxu1 %v1753_v35 }
 0x55b   :  { %1666 = vmatprep.subr.bf16.mxu1 %v1754_v36 }
 0x55c   :  { %v833_v3 = vpop.f32.mrb[20].mxu0 }
 0x55d   :  { %v1662_v18 = vpop.f32.mrb[21].mxu0 }
 0x55e   :  { %v836_v4 = vpop.f32.mrb[22].mxu0  ;;  %1667 = vmatpush3.bf16.msra.mxu1 %v1754_v36 }
 0x55f   :  { %v841_v19 = vpack.c.bf16 %v836_v4, %v833_v3  ;;  %v1663_v20 = vpop.f32.mrb[23].mxu0  ;;  %1668 = vmatprep.subr.bf16.mxu1 %v1755_v37 }
 0x561   :  { %1018 = vmatmul.mubr.bf16.gmra.mrb[20].mxu1 %v841_v19 }
 0x562   :  { %1669 = vmatpush3.bf16.msra.mxu1 %v1755_v37  ;;  %v1057_v37 = vld [vmem:[%s2248_s12] sm:$0x1] }
 0x563   :  { %1670 = vmatprep.subr.bf16.mxu1 %v1756_v38 }
 0x566   :  { %1671 = vmatpush3.bf16.msra.mxu1 %v1756_v38 }
 0x567   :  { %1672 = vmatprep.subr.bf16.mxu1 %v1757_v39 }
 0x56a   :  { %1673 = vmatpush3.bf16.msra.mxu1 %v1757_v39 }
 0x56b   :  { %1674 = vmatprep.subr.bf16.mxu1 %v1758_v40 }
 0x56e   :  { %1675 = vmatpush3.bf16.msra.mxu1 %v1758_v40 }
 0x56f   :  { %1676 = vmatprep.subr.bf16.mxu1 %v1759_v41 }
 0x572   :  { %1677 = vmatpush3.bf16.msra.mxu1 %v1759_v41  ;;  %v1468_v41 = vld [vmem:[%s2249_s13] ss:$0 sm:$0xff]  ;;  %s1801_s13 = smov [#allocation2]  }
 0x573   :  { %1678 = vmatprep.subr.bf16.mxu1 %v1760_v42  ;;  %s1398_s18 = sshll.u32 %s1801_s13, 4  ;;  %s1399_s18 = int_to_ptr.vmem [resolvable:$true] %s1398_s18 }
 0x574   :  { %p1780_p1 = scmp.lt.s32.totalorder %s1399_s18, %s1399_s18 }
 0x576   :  { %1679 = vmatpush3.bf16.msra.mxu1 %v1760_v42 }
 0x57c   :  { %v1606_v21 = vpop.f32.mrb[24].mxu0 }
 0x57d   :  { %v1607_v22 = vpop.f32.mrb[25].mxu0 }
 0x57e   :  { %v2175_v23 = vadd.f32 %v1607_v22, %v1606_v21  ;;  %v1609_v24 = vpop.f32.mrb[26].mxu0 }
 0x57f   :  { %v1610_v25 = vpop.f32.mrb[27].mxu0 }
 0x580   :  { %v2177_v26 = vadd.f32 %v1610_v25, %v1609_v24 }
 0x584   :  { %v1612_v27 = vpop.f32.mrb[28].mxu0 }
 0x585   :  { %v1613_v29 = vpop.f32.mrb[29].mxu0 }
 0x586   :  { %v2179_v30 = vadd.f32 %v1613_v29, %v1612_v27  ;;  %v1615_v31 = vpop.f32.mrb[30].mxu0 }
 0x587   :  { %v1616_v32 = vpop.f32.mrb[31].mxu0 }
 0x588   :  { %v2181_v33 = vadd.f32 %v1616_v32, %v1615_v31 }
 0x62c   :  { %v1578_v43 = vpop.f32.mrb[16].mxu1 }
 0x62d   :  { %v1579_v45 = vpop.f32.mrb[17].mxu1 }
 0x62e   :  { %v1580_v46 = vadd.f32 %v1579_v45, %v1578_v43  ;;  %v1581_v47 = vpop.f32.mrb[18].mxu1 }
 0x62f   :  { %v1582_v48 = vpop.f32.mrb[19].mxu1 }
 0x630   :  { %v1012_v49 = vadd.f32 %v1580_v46, %v1451_v44  ;;  %v1583_v50 = vadd.f32 %v1582_v48, %v1581_v47 }
 0x632   :  { %v1026_v51 = vmax.f32 %v1012_v49, 0.0  ;;  %v1015_v52 = vadd.f32 %v1583_v50, %v1451_v44 }
 0x634   :  { %v1027_v53 = vmax.f32 %v1015_v52, 0.0  ;;  %v1584_v55 = vpop.f32.mrb[20].mxu1  ;;  %v1040_v57 = vmul.f32 %v1026_v51, %v1026_v51 }
 0x635   :  { %v1585_v56 = vpop.f32.mrb[21].mxu1 }
 0x636   :  { %v1030_v58 = vadd.f32 %v1027_v53, %v1026_v51  ;;  %v1041_v59 = vmul.f32 %v1027_v53, %v1027_v53  ;;  %v1586_v60 = vadd.f32 %v1585_v56, %v1584_v55  ;;  %v1587_v61 = vpop.f32.mrb[22].mxu1 }
 0x637   :  { %v1588_v28 = vpop.f32.mrb[23].mxu1 }
 0x638   :  { %v1044_v11 = vadd.f32 %v1041_v59, %v1040_v57  ;;  %v1020_v62 = vadd.f32 %v1586_v60, %v1451_v44  ;;  %v1589_v34 = vadd.f32 %v1588_v28, %v1587_v61 }
 0x63a   :  { %v1028_v63 = vmax.f32 %v1020_v62, 0.0  ;;  %v1023_v0 = vadd.f32 %v1589_v34, %v1451_v44 }
 0x63c   :  { %v1031_v1 = vadd.f32 %v1030_v58, %v1028_v63  ;;  %v1042_v2 = vmul.f32 %v1028_v63, %v1028_v63  ;;  %v1029_v5 = vmax.f32 %v1023_v0, 0.0 }
 0x63e   :  { %v1045_v6 = vadd.f32 %v1044_v11, %v1042_v2  ;;  %v1032_v7 = vadd.f32 %v1031_v1, %v1029_v5  ;;  %v1043_v8 = vmul.f32 %v1029_v5, %v1029_v5 }
 0x640   :  { %v1033_v9 = vrot.slane %v1032_v7, 4  ;;  %v1046_v10 = vadd.f32 %v1045_v6, %v1043_v8 }
 0x642   :  { %v1034_v12 = vadd.f32 %v1033_v9, %v1032_v7  ;;  %v1047_v13 = vrot.slane %v1046_v10, 4 }
 0x644   :  { %v1035_v14 = vrot.slane %v1034_v12, 2  ;;  %v1048_v15 = vadd.f32 %v1047_v13, %v1046_v10 }
 0x646   :  { %v1036_v16 = vadd.f32 %v1035_v14, %v1034_v12  ;;  %v1049_v17 = vrot.slane %v1048_v15, 2 }
 0x648   :  { %v1037_v3 = vrot.slane %v1036_v16, 1  ;;  %v1050_v18 = vadd.f32 %v1049_v17, %v1048_v15 }
 0x64a   :  { %v1038_v4 = vadd.f32 %v1037_v3, %v1036_v16  ;;  %v1051_v19 = vrot.slane %v1050_v18, 1 }
 0x64c   :  { %v1039_v20 = vmul.f32 0.03125, %v1038_v4  ;;  %v1052_v21 = vadd.f32 %v1051_v19, %v1050_v18 }
 0x64e   :  { %v1053_v22 = vmul.f32 0.03125, %v1052_v21  ;;  %v1054_v24 = vmul.f32 %v1039_v20, %v1039_v20  ;;  %v1064_v25 = vsub.f32 %v1029_v5, %v1039_v20  ;;  %v1061_v27 = vsub.f32 %v1026_v51, %v1039_v20 }
 0x64f   :  { %v1062_v29 = vsub.f32 %v1027_v53, %v1039_v20  ;;  %v1063_v31 = vsub.f32 %v1028_v63, %v1039_v20 }
 0x650   :  { %v1055_v32 = vsub.f32 %v1053_v22, %v1054_v24 }
 0x652   :  { %v1056_v35 = vmax.f32 %v1055_v32, 0.0 }
 0x654   :  { %v1058_v36 = vadd.f32 1e-05, %v1056_v35 }
 0x656   :  { %1773 = vrsqrt.f32 %v1058_v36 }
 0x660   :  { %v1774_v38 = vpop.eup %1773 }
 0x661   :  { %v1060_v39 = vmul.f32 %v1774_v38, %v1057_v37 }
 0x663   :  { %v1069_v40 = vrot.slane %v1060_v39, %v1991_v54  ;;  %v1469_v54 = vld [vmem:[%s2251_s15] ss:$0 sm:$0xff]  ;;  %s1775_s15 = scalar_lea.vmem %s1399_s18, 512 }
 0x664   :  { %v1330_v52 = vadd.f32 %v2179_v30, %v1469_v54  ;;  %v1322_v55 = vadd.f32 %v2175_v23, %v1469_v54  ;;  %v1333_v58 = vadd.f32 %v2181_v33, %v1469_v54  ;;  %v1325_v61 = vadd.f32 %v2177_v26, %v1469_v54  ;;  %p1776_p0 = scmp.ne.s32.totalorder %s1399_s18, %s1775_s15  ;;  %p1781_p2 = scmp.lt.s32.totalorder %s1775_s15, %s1775_s15 }
 0x665   :  { %v1074_v42 = vmul.f32 %v1069_v40, %v1064_v25  ;;  %v1071_v43 = vmul.f32 %v1069_v40, %v1061_v27  ;;  %v1072_v44 = vmul.f32 %v1069_v40, %v1062_v29  ;;  %v1073_v45 = vmul.f32 %v1069_v40, %v1063_v31 }
 0x666   :  { %p1782_p3 = por %p1781_p2, %p1780_p1 }
 0x667   :  { %v1082_v46 = vadd.f32 %v1468_v41, %v1071_v43  ;;  %v1083_v47 = vadd.f32 %v1468_v41, %v1072_v44  ;;  %v1084_v48 = vadd.f32 %v1468_v41, %v1073_v45  ;;  %v1085_v49 = vadd.f32 %v1468_v41, %v1074_v42 }
 0x668   :  { %p1783_p4 = pnand %p1782_p3, %p1776_p0 }
 0x669   :  { %v1086_v50 = vpack.c.bf16 %v1083_v47, %v1082_v46  ;;  %v1087_v51 = vpack.c.bf16 %v1085_v49, %v1084_v48 }
 0x66b   :  { %1680 = vmatprep.mubr.bf16.mxu1 %v1086_v50 }
 0x66c   :  { %1681 = vmatmul.mubr.bf16.vlgmr.msra.gmra.mrb[24].mxu1 %v1087_v51 }
 0x73f   :  { %v1682_v53 = vpop.f32.mrb[24].mxu1 }
 0x740   :  { %v1379_v56 = vadd.f32 %v1682_v53, %v1330_v52  ;;  %v1370_v57 = vpop.f32.mrb[25].mxu1 }
 0x741   :  { %v1371_v59 = vadd.f32 %v1370_v57, %v1322_v55  ;;  %v1683_v60 = vpop.f32.mrb[26].mxu1 }
 0x742   :  { %v1387_v28 = vmax.f32 %v1379_v56, 0.0  ;;  %v1382_v11 = vadd.f32 %v1683_v60, %v1333_v58  ;;  %v1373_v62 = vpop.f32.mrb[27].mxu1 }
 0x743   :  { %v1385_v34 = vmax.f32 %v1371_v59, 0.0  ;;  %v1374_v63 = vadd.f32 %v1373_v62, %v1325_v61 }
 0x744   :  { %1391 = vst [vmem:[#allocation2 + $0x10] sm:$0xff] %v1387_v28  ;;  %v1388_v30 = vmax.f32 %v1382_v11, 0.0 }
 0x745   :  { %1389 = vst [vmem:[#allocation2] sm:$0xff] %v1385_v34  ;;  %v1386_v0 = vmax.f32 %v1374_v63, 0.0 }
 0x746   :  { %1392 = vst [vmem:[#allocation2 + $0x18] sm:$0xff] %v1388_v30 }
 0x747   :  { %1390 = vst [vmem:[#allocation2 + $0x8] sm:$0xff] %v1386_v0 }
 0x748   :  { %1786 = shalt.err (!%p1783_p4)
}
 0x749   :  { %s1787_s20 = scalar_lea.hbm %s2252_s16, 512 }
 0x74a   :  { %p1788_p5 = scmp.ne.s32.totalorder %s2252_s16, %s1787_s20  ;;  %p1791_p6 = scmp.lt.u32.totalorder %s1787_s20, %s2252_s16 }
 0x74c   :  { %p1793_p7 = pnand %p1791_p6, %p1788_p5 }
 0x74e   :  { %1796 = shalt.err (!%p1793_p7)
}
 0x74f   :  { %s1802_s22 = smov 128   ;;  %s1803_s7 = smov 8  }
 0x750   :  { %1404 = dma.vmem_to_hbm [thread:$0]  %s1399_s18, 512, %s2252_s16, [#allocation3], %s1802_s22, %s1802_s22, %s1803_s7  }
 0x751   :  { %1797 = dma.done.wait [#allocation3], 512  }
 0x752   :  { %1798 = vsyncadd [#allocation3], 4294966784 }
 0x753   :  { %1408 = vsyncpa [#allocation3], 1 }

</bundles_post_ra>
